<compile_context>
chip_gen: v6e
topology: v6e:2x2x1
jax: 0.10.0
libtpu: 0.0.40
codegen_flags: <defaults>
</compile_context>

<pallas_src>
import jax
import jax.numpy as jnp
from jax.experimental import pallas as pl
from jax.experimental.pallas import tpu as pltpu


def attention_dot_kernel(x_ref, q_ref, wx_ref, bx_ref, wq_ref, bq_ref,
                         wl_ref, out_ref):
    """One tile of `tb` batch elements per grid step.

    x_ref  : (tb*F, x_dim)   q_ref : (tb, q_dim)
    wx_ref : (x_dim, H)      bx_ref: (1, H)
    wq_ref : (q_dim, H)      bq_ref: (1, H)
    wl_ref : (1, H)          out_ref: (8, tb*F/8) or (1, tb*F)  [lane-dense slab]
    """
    rows = x_ref.shape[0]
    tb = q_ref.shape[0]
    f = rows // tb
    h = wx_ref.shape[1]

    # x_proj: weight-normed Linear + ReLU -- one MXU pass over tb*F rows,
    # f32 accumulation regardless of the (possibly bf16/fp8) MXU input dtype.
    xp = jnp.maximum(
        jnp.dot(x_ref[...], wx_ref[...], preferred_element_type=jnp.float32)
        + bx_ref[...], 0.0)                                   # (tb*F, H) f32

    # q_proj: one batched matmul per tile (tb rows), not one per batch element.
    qp = jnp.maximum(
        jnp.dot(q_ref[...], wq_ref[...], preferred_element_type=jnp.float32)
        + bq_ref[...], 0.0)                                   # (tb, H) f32

    # joint = x_proj * q_proj (dropout with p=0.0 is identity), then
    # Linear(H, 1) as a lane reduction: fold wl into qp so the big (tb, F, H)
    # product is multiplied only once. The scalar bias bl cancels in softmax.
    # NOTE: the (tb*F, H) -> (tb, F, H) reshape is layout-preserving only while
    # F matches the f32 sublane group (F == 8 here); if F is ever not a
    # multiple of 8, pad F or compute in 2D with a sublane-repeated qw.
    qw = qp * wl_ref[...]                                     # (tb, H)
    scores = jnp.sum(xp.reshape(tb, f, h) * qw[:, None, :], axis=-1)  # (tb, F)

    # softmax over the feature axis F (PyTorch dim=1), F on the lane axis.
    m = jnp.max(scores, axis=-1, keepdims=True)               # (tb, 1)
    e = jnp.exp(scores - m)                                   # (tb, F)
    p = e * pl.reciprocal(jnp.sum(e, axis=-1, keepdims=True), approx=True)

    # Lane-dense store: relayout the small (tb, F) block into the slab shape
    # (cheap XLU/VMEM-copy on a tiny array) so the vst path is unmasked.
    out_ref[...] = p.reshape(out_ref.shape).astype(out_ref.dtype)


def _default_tb(B, F_, x_dim, hidden, mxu_dtype):
    """Pick batch elements per grid step (always divides B).

    Whole batch in 1-2 grid steps (amortizes the ~0.35us per-step overhead;
    2 even steps keep both v7x TensorCores busy via the 'parallel' axis),
    capped so rows = tb*F stays <= 64K and the live VMEM footprint stays under
    ~24 MiB. When tb < B, tb is a multiple of the MXU dtype sublane tile.
    """
    itemsize = jnp.dtype(mxu_dtype).itemsize
    sub = {4: 8, 2: 16, 1: 32}[itemsize]
    bytes_per_row = 2 * x_dim * itemsize + 2 * hidden * 4 + 16
    max_rows = min(65536, max(1024, (24 << 20) // bytes_per_row))
    cap_b = max(1, max_rows // max(F_, 1))

    if B <= cap_b:
        half = B // 2
        if B % 2 == 0 and half % sub == 0 and half * F_ >= 128:
            return half          # 2 even grid steps (v7x megacore friendly)
        return B                 # single step (fine on 1-TC v5e/v6e)

    # B too large for 1-2 steps: largest sublane-aligned divisor of B <= cap_b.
    tb = (cap_b // sub) * sub
    while tb >= sub and B % tb:
        tb -= sub
    if tb >= sub:
        return tb
    # TODO(synk): pathological B with no sublane-aligned divisor under the cap;
    # fall back to full-dim single-step blocks rather than risk a tiling error.
    return B


def attention_forward(x, q, params, *, tb=None, mxu_dtype=jnp.bfloat16):
    """x: [B, F, x_dim] f32, q: [B, q_dim] f32 -> attention weights [B, F] f32.

    mxu_dtype: dtype fed to the MXU matmuls. bf16 (default, all generations)
               halves x HBM traffic; jnp.float32 for full precision; an fp8
               dtype (e.g. jnp.float8_e4m3fn) is an option on v7x.
    tb:        batch elements per grid step (must divide B). Default: whole
               batch in 1-2 steps, VMEM/row capped (see _default_tb).
    """
    B, F_, x_dim = x.shape
    q_dim = q.shape[-1]
    H = params["wx"].shape[1]

    if tb is None:
        tb = _default_tb(B, F_, x_dim, H, mxu_dtype)
    assert B % tb == 0, (B, tb)
    ntiles = B // tb
    rows = tb * F_

    # Lane-dense output slab; per-block element order equals the row-major
    # order of the (tb, F) scores block, so [B, F] is a free reshape below.
    if rows % 8 == 0:
        out_r, out_c = 8, rows // 8
    else:
        out_r, out_c = 1, rows

    # Cast the MXU operands (x is the only large tensor); keep biases / wl /
    # softmax in f32 (VPU/EUP path, f32 on every generation).
    x2d = x.reshape(B * F_, x_dim).astype(mxu_dtype)
    q2d = q.astype(mxu_dtype)
    wx = params["wx"].astype(mxu_dtype)
    wq = params["wq"].astype(mxu_dtype)
    bx = params["bx"].astype(jnp.float32)
    bq = params["bq"].astype(jnp.float32)
    wl = params["wl"].astype(jnp.float32)          # (1, H) row

    itemsize = jnp.dtype(mxu_dtype).itemsize
    cost = pl.CostEstimate(
        flops=2 * B * F_ * x_dim * H          # x_proj matmul
        + 2 * B * q_dim * H                   # q_proj matmul
        + 2 * B * F_ * H                      # joint * reduce
        + 5 * B * F_,                         # softmax elementwise
        transcendentals=B * F_ + B,           # exp + reciprocal
        bytes_accessed=(B * F_ * x_dim + B * q_dim
                        + x_dim * H + q_dim * H) * itemsize
        + (2 * H + H) * 4 + B * F_ * 4,
    )

    # NOTE: if a bundle dump ever shows exposed DMA waits on the x tile (only
    # plausible when ntiles > 2), set pipeline_mode=pl.Buffered(3) on the x
    # in_spec only; weight/bias specs use a constant index_map and are fetched
    # once, so deeper buffering there would just waste VMEM (notably on v7x).
    out2d = pl.pallas_call(
        attention_dot_kernel,
        out_shape=jax.ShapeDtypeStruct((ntiles * out_r, out_c), jnp.float32),
        grid_spec=pltpu.PrefetchScalarGridSpec(
            num_scalar_prefetch=0,
            grid=(ntiles,),
            in_specs=[
                pl.BlockSpec((rows, x_dim), lambda b: (b, 0)),   # x rows tile
                pl.BlockSpec((tb, q_dim), lambda b: (b, 0)),     # q tile
                pl.BlockSpec((x_dim, H), lambda b: (0, 0)),      # wx (resident)
                pl.BlockSpec((1, H), lambda b: (0, 0)),          # bx
                pl.BlockSpec((q_dim, H), lambda b: (0, 0)),      # wq (resident)
                pl.BlockSpec((1, H), lambda b: (0, 0)),          # bq
                pl.BlockSpec((1, H), lambda b: (0, 0)),          # wl row
            ],
            out_specs=pl.BlockSpec((out_r, out_c), lambda b: (b, 0)),
        ),
        compiler_params=pltpu.CompilerParams(
            dimension_semantics=("parallel",)),   # megacore-shardable on v7x
        cost_estimate=cost,
    )(x2d, q2d, wx, bx, wq, bq, wl)

    return out2d.reshape(B, F_)


def init_params(key, x_dim, q_dim, hidden):
    """Deterministic PyTorch-Linear-style init (uniform +/- 1/sqrt(fan_in))."""
    ks = jax.random.split(key, 6)

    def linear(kw, kb, fan_in, fan_out):
        bound = float(1.0 / (fan_in ** 0.5))
        w = jax.random.uniform(kw, (fan_in, fan_out), jnp.float32, -bound, bound)
        b = jax.random.uniform(kb, (1, fan_out), jnp.float32, -bound, bound)
        return w, b

    wx, bx = linear(ks[0], ks[1], x_dim, hidden)   # x_proj
    wq, bq = linear(ks[2], ks[3], q_dim, hidden)   # q_proj
    wl, bl = linear(ks[4], ks[5], hidden, 1)       # final linear

    def weight_norm_eff(v):
        # W_eff = g * V / ||V||_F with g = ||V||_F at init  ==>  W_eff == V
        g = jnp.linalg.norm(v)
        return (g / jnp.linalg.norm(v)) * v

    return dict(wx=weight_norm_eff(wx), bx=bx,
                wq=weight_norm_eff(wq), bq=bq,
                wl=weight_norm_eff(wl).T,   # stored as (1, H) row (lane layout)
                bl=bl)                       # kept for fidelity; cancels in softmax


def reference_forward(x, q, p):
    xp = jax.nn.relu(jnp.einsum("bfd,dh->bfh", x, p["wx"]) + p["bx"])
    qp = jax.nn.relu(q @ p["wq"] + p["bq"][0])
    joint = xp * qp[:, None, :]
    scores = jnp.einsum("bfh,h->bf", joint, p["wl"][0]) + p["bl"][0, 0]
    return jax.nn.softmax(scores, axis=-1)


if __name__ == "__main__":
    B, F_, x_dim, hidden = 2, 8, 16, 32
    q_dim = hidden * 2  # docstring: q is [B, hidden_size*2]

    key = jax.random.PRNGKey(0)
    kx, kq, kp, kx2, kq2 = jax.random.split(key, 5)
    x = jax.random.normal(kx, (B, F_, x_dim), jnp.float32)
    q = jax.random.normal(kq, (B, q_dim), jnp.float32)
    params = init_params(kp, x_dim, q_dim, hidden)

    # f32 MXU path (full precision); only deviation from the reference is the
    # approx reciprocal in the softmax denominator.
    out = jax.block_until_ready(
        attention_forward(x, q, params, mxu_dtype=jnp.float32))
    ref = reference_forward(x, q, params)
    assert out.shape == (B, F_)
    assert jnp.allclose(out, ref, atol=5e-3, rtol=5e-3), (out, ref)
    assert jnp.allclose(jnp.sum(out, axis=1), jnp.ones((B,)), atol=5e-3)

    # Default bf16 MXU path on a larger batch: auto tb puts the whole batch in
    # 2 even 'parallel' grid steps (tb=128 -> 1024 rows/step, lane-dense
    # (8, 128) output blocks, no masked stores).
    B2 = 256
    x2 = jax.random.normal(kx2, (B2, F_, x_dim), jnp.float32)
    q2 = jax.random.normal(kq2, (B2, q_dim), jnp.float32)
    out2 = jax.block_until_ready(attention_forward(x2, q2, params))
    ref2 = reference_forward(x2, q2, params)
    assert out2.shape == (B2, F_)
    assert jnp.allclose(out2, ref2, atol=3e-2, rtol=3e-2), (out2, ref2)
    assert jnp.allclose(jnp.sum(out2, axis=1), jnp.ones((B2,)), atol=1e-2)

    print("KERNEL_OK")
</pallas_src>

<mosaic_0001>
module attributes {stable_mosaic.version = 11 : i64} {
  func.func @attention_dot_kernel(%arg0: i32, %arg1: memref<16x16xf32, #tpu.memory_space<vmem>>, %arg2: memref<2x64xf32, #tpu.memory_space<vmem>>, %arg3: memref<16x32xf32, #tpu.memory_space<vmem>>, %arg4: memref<1x32xf32, #tpu.memory_space<vmem>>, %arg5: memref<64x32xf32, #tpu.memory_space<vmem>>, %arg6: memref<1x32xf32, #tpu.memory_space<vmem>>, %arg7: memref<1x32xf32, #tpu.memory_space<vmem>>, %arg8: memref<8x2xf32, #tpu.memory_space<vmem>>) attributes {dimension_semantics = [#tpu.dimension_semantics<parallel>], iteration_bounds = array<i64: 1>, scalar_prefetch = 0 : i64, scratch_operands = 0 : i64, tpu.core_type = #tpu.core_type<tc>, window_params = [{transform_indices = @transform_0, window_bounds = array<i64: 16, 16>}, {transform_indices = @transform_1, window_bounds = array<i64: 2, 64>}, {pipeline_mode = #tpu.pipeline_mode<synchronous>, transform_indices = @transform_2, window_bounds = array<i64: 16, 32>}, {pipeline_mode = #tpu.pipeline_mode<synchronous>, transform_indices = @transform_3, window_bounds = array<i64: 1, 32>}, {pipeline_mode = #tpu.pipeline_mode<synchronous>, transform_indices = @transform_4, window_bounds = array<i64: 64, 32>}, {pipeline_mode = #tpu.pipeline_mode<synchronous>, transform_indices = @transform_5, window_bounds = array<i64: 1, 32>}, {pipeline_mode = #tpu.pipeline_mode<synchronous>, transform_indices = @transform_6, window_bounds = array<i64: 1, 32>}, {transform_indices = @transform_7, window_bounds = array<i64: 8, 2>}]} {
    %c0 = arith.constant 0 : index
    %c0_0 = arith.constant 0 : index
    %0 = vector.load %arg1[%c0, %c0_0] : memref<16x16xf32, #tpu.memory_space<vmem>>, vector<16x16xf32>
    %c0_1 = arith.constant 0 : index
    %c0_2 = arith.constant 0 : index
    %1 = vector.load %arg3[%c0_1, %c0_2] : memref<16x32xf32, #tpu.memory_space<vmem>>, vector<16x32xf32>
    %cst = arith.constant dense<0.000000e+00> : vector<16x32xf32>
    %2 = tpu.matmul %0, %1, %cst {dimension_numbers = #tpu.dot_dimension_numbers<[1], [0], [0], [1], [0, 0, 1, 1], [], []>} : vector<16x16xf32>, vector<16x32xf32>, vector<16x32xf32> -> vector<16x32xf32>
    %c0_3 = arith.constant 0 : index
    %c0_4 = arith.constant 0 : index
    %3 = vector.load %arg4[%c0_3, %c0_4] : memref<1x32xf32, #tpu.memory_space<vmem>>, vector<1x32xf32>
    %4 = vector.broadcast %3 : vector<1x32xf32> to vector<16x32xf32>
    %5 = arith.addf %2, %4 : vector<16x32xf32>
    %cst_5 = arith.constant 0.000000e+00 : f32
    %6 = vector.broadcast %cst_5 : f32 to vector<16x32xf32>
    %7 = arith.maximumf %5, %6 : vector<16x32xf32>
    %c0_6 = arith.constant 0 : index
    %c0_7 = arith.constant 0 : index
    %8 = vector.load %arg2[%c0_6, %c0_7] : memref<2x64xf32, #tpu.memory_space<vmem>>, vector<2x64xf32>
    %c0_8 = arith.constant 0 : index
    %c0_9 = arith.constant 0 : index
    %9 = vector.load %arg5[%c0_8, %c0_9] : memref<64x32xf32, #tpu.memory_space<vmem>>, vector<64x32xf32>
    %cst_10 = arith.constant dense<0.000000e+00> : vector<2x32xf32>
    %10 = tpu.matmul %8, %9, %cst_10 {dimension_numbers = #tpu.dot_dimension_numbers<[1], [0], [0], [1], [0, 0, 1, 1], [], []>} : vector<2x64xf32>, vector<64x32xf32>, vector<2x32xf32> -> vector<2x32xf32>
    %c0_11 = arith.constant 0 : index
    %c0_12 = arith.constant 0 : index
    %11 = vector.load %arg6[%c0_11, %c0_12] : memref<1x32xf32, #tpu.memory_space<vmem>>, vector<1x32xf32>
    %12 = vector.broadcast %11 : vector<1x32xf32> to vector<2x32xf32>
    %13 = arith.addf %10, %12 : vector<2x32xf32>
    %cst_13 = arith.constant 0.000000e+00 : f32
    %14 = vector.broadcast %cst_13 : f32 to vector<2x32xf32>
    %15 = arith.maximumf %13, %14 : vector<2x32xf32>
    %c0_14 = arith.constant 0 : index
    %c0_15 = arith.constant 0 : index
    %16 = vector.load %arg7[%c0_14, %c0_15] : memref<1x32xf32, #tpu.memory_space<vmem>>, vector<1x32xf32>
    %17 = vector.broadcast %16 : vector<1x32xf32> to vector<2x32xf32>
    %18 = arith.mulf %15, %17 : vector<2x32xf32>
    %19 = vector.shape_cast %7 : vector<16x32xf32> to vector<2x8x32xf32>
    %20 = vector.shape_cast %18 : vector<2x32xf32> to vector<2x1x32xf32>
    %21 = vector.broadcast %20 : vector<2x1x32xf32> to vector<2x8x32xf32>
    %22 = arith.mulf %19, %21 : vector<2x8x32xf32>
    %cst_16 = arith.constant dense<0.000000e+00> : vector<2x8xf32>
    %23 = vector.multi_reduction <add>, %22, %cst_16 [2] : vector<2x8x32xf32> to vector<2x8xf32>
    %cst_17 = arith.constant dense<0xFF800000> : vector<2xf32>
    %24 = vector.multi_reduction <maximumf>, %23, %cst_17 [1] : vector<2x8xf32> to vector<2xf32>
    %25 = vector.shape_cast %24 : vector<2xf32> to vector<2x1xf32>
    %26 = vector.broadcast %25 : vector<2x1xf32> to vector<2x8xf32>
    %27 = arith.subf %23, %26 : vector<2x8xf32>
    %28 = math.exp %27 : vector<2x8xf32>
    %cst_18 = arith.constant dense<0.000000e+00> : vector<2xf32>
    %29 = vector.multi_reduction <add>, %28, %cst_18 [1] : vector<2x8xf32> to vector<2xf32>
    %30 = vector.shape_cast %29 : vector<2xf32> to vector<2x1xf32>
    %31 = tpu.reciprocal %30 {approx = true} : vector<2x1xf32> -> vector<2x1xf32>
    %32 = vector.broadcast %31 : vector<2x1xf32> to vector<2x8xf32>
    %33 = arith.mulf %28, %32 : vector<2x8xf32>
    %34 = vector.shape_cast %33 : vector<2x8xf32> to vector<8x2xf32>
    %c0_19 = arith.constant 0 : index
    %c0_20 = arith.constant 0 : index
    %35 = vector.load %arg8[%c0_19, %c0_20] : memref<8x2xf32, #tpu.memory_space<vmem>>, vector<8x2xf32>
    tpu.vector_store %arg8[%c0_19, %c0_20], %34 {strides = array<i32>} : memref<8x2xf32, #tpu.memory_space<vmem>>, vector<8x2xf32>,
    return
  }
  func.func @transform_0(%arg0: i32) -> (i32, i32) {
    %c0_i32 = arith.constant 0 : i32
    %c0_i32_0 = arith.constant 0 : i32
    return %arg0, %c0_i32 : i32, i32
  }
  func.func @transform_1(%arg0: i32) -> (i32, i32) {
    %c0_i32 = arith.constant 0 : i32
    %c0_i32_0 = arith.constant 0 : i32
    return %arg0, %c0_i32 : i32, i32
  }
  func.func @transform_2(%arg0: i32) -> (i32, i32) {
    %c0_i32 = arith.constant 0 : i32
    %c0_i32_0 = arith.constant 0 : i32
    %c0_i32_1 = arith.constant 0 : i32
    return %c0_i32, %c0_i32_0 : i32, i32
  }
  func.func @transform_3(%arg0: i32) -> (i32, i32) {
    %c0_i32 = arith.constant 0 : i32
    %c0_i32_0 = arith.constant 0 : i32
    %c0_i32_1 = arith.constant 0 : i32
    return %c0_i32, %c0_i32_0 : i32, i32
  }
  func.func @transform_4(%arg0: i32) -> (i32, i32) {
    %c0_i32 = arith.constant 0 : i32
    %c0_i32_0 = arith.constant 0 : i32
    %c0_i32_1 = arith.constant 0 : i32
    return %c0_i32, %c0_i32_0 : i32, i32
  }
  func.func @transform_5(%arg0: i32) -> (i32, i32) {
    %c0_i32 = arith.constant 0 : i32
    %c0_i32_0 = arith.constant 0 : i32
    %c0_i32_1 = arith.constant 0 : i32
    return %c0_i32, %c0_i32_0 : i32, i32
  }
  func.func @transform_6(%arg0: i32) -> (i32, i32) {
    %c0_i32 = arith.constant 0 : i32
    %c0_i32_0 = arith.constant 0 : i32
    %c0_i32_1 = arith.constant 0 : i32
    return %c0_i32, %c0_i32_0 : i32, i32
  }
  func.func @transform_7(%arg0: i32) -> (i32, i32) {
    %c0_i32 = arith.constant 0 : i32
    %c0_i32_0 = arith.constant 0 : i32
    return %arg0, %c0_i32 : i32, i32
  }
}

</mosaic_0001>

<bundles_post_ra>
// kernel: tpu_custom_call.1
= control target key start
LH: loop header
LB: loop body
LE: loop exit
PB: predicated region body
PF: predicated region fallthrough
CT: control target
= control target key end

     0   :  { %v559_v0 = vmov 0.0   ;;  %vm560_vm0 = vmmov 0   ;;  %vm37_vm1 = vcmask 130048   ;;  %vm137_vm2 = vcmask 523264   ;;  %s681_s4 = inlined_call_operand.vmem [shape: f32[64,32], index: 4, kind: input, shape index: {}]   ;;  %s682_s2 = inlined_call_operand.vmem [shape: f32[16,32], index: 2, kind: input, shape index: {}]   ;;  %s683_s0 = inlined_call_operand.vmem [shape: f32[16,16], index: 0, kind: input, shape index: {}]   ;;  %s684_s1 = inlined_call_operand.vmem [shape: f32[2,64], index: 1, kind: input, shape index: {}]   ;;  %s685_s5 = inlined_call_operand.vmem [shape: f32[1,32], index: 5, kind: input, shape index: {}]   ;;  %s686_s6 = inlined_call_operand.vmem [shape: f32[1,32], index: 6, kind: input, shape index: {}]   ;;  %s687_s3 = inlined_call_operand.vmem [shape: f32[1,32], index: 3, kind: input, shape index: {}]   ;;  %s688_s7 = inlined_call_operand.vmem [shape: f32[8,2], index: 7, kind: output, shape index: {}]  }
   0x1   :  { %527 = vmatprep.subr.mxu1 %v559_v0  ;;  %v129_v1 = vld [vmem:[%s681_s4 + $0x38] sm:$0xff]  ;;  %v128_v2 = vld [vmem:[%s681_s4 + $0x30] sm:$0xff]  ;;  %543 = vmatprep.mubr.msk.f32.mxu1 %vm560_vm0, %v559_v0  ;;  %v127_v3 = vld [vmem:[%s681_s4 + $0x28] sm:$0xff]  ;;  %v561_v14 = vmov 1966171168   ;;  %v224_v16 = vlaneseq  ;;  %vm255_vm3 = vcmask 261120  }
   0x2   :  { %528 = vmatpush3.msra.mxu1 %v129_v1  ;;  %v29_v4 = vld [vmem:[%s682_s2 + $0x8] sm:$0xff]  ;;  %v28_v5 = vld [vmem:[%s682_s2] sm:$0xff]  ;;  %v125_v9 = vld [vmem:[%s681_s4 + $0x18] sm:$0xff]  ;;  %v222_v15 = vunpack.c.l.s4 %v561_v14  ;;  %vm274_vm4 = vcmask 1041409   ;;  %vm277_vm5 = vcmask 58368   ;;  %v562_v53 = vmov 0  }
   0x3   :  { %529 = vmatprep.subr.mxu1 %v559_v0  ;;  %520 = vmatprep.subr.mxu0 %v29_v4  ;;  %v126_v6 = vld [vmem:[%s681_s4 + $0x20] sm:$0xff]  ;;  %v27_v8 = vld [vmem:[%s683_s0 + $0x8] sm:$0xff]  ;;  %v124_v10 = vld [vmem:[%s681_s4 + $0x10] sm:$0xff]  ;;  %v646_v19 = vshrl.u32 %v224_v16, 7  ;;  %v265_v45 = vand.u32 127, %v224_v16  ;;  %vm482_vm6 = vcmask 1042434  }
   0x4   :  { %530 = vmatpush3.msra.mxu1 %v128_v2  ;;  %521 = vmatpush3.msra.mxu0 %v29_v4  ;;  %v26_v7 = vld [vmem:[%s683_s0] sm:$0xff]  ;;  %v123_v11 = vld [vmem:[%s681_s4 + $0x8] sm:$0xff]  ;;  %v223_v18 = vunpack.c.0.s8 %v222_v15  ;;  %vm484_vm7 = vcmask 1043459   ;;  %vm486_vm8 = vcmask 1044484   ;;  %vm488_vm9 = vcmask 1045509  }
   0x5   :  { %531 = vmatprep.subr.mxu1 %v559_v0  ;;  %522 = vmatprep.subr.mxu0 %v28_v5  ;;  %v122_v12 = vld [vmem:[%s681_s4] sm:$0xff]  ;;  %v245_v32 = vsub.s32 0, %v646_v19  ;;  %v657_v47 = vsub.s32 %v265_v45, %v646_v19  ;;  %v288_v54 = vsub.s32 1, %v646_v19  ;;  %vm490_vm10 = vcmask 1046534  }
   0x6   :  { %532 = vmatpush3.msra.mxu1 %v127_v3  ;;  %523 = vmatpush3.msra.mxu0 %v28_v5  ;;  %v121_v13 = vld [vmem:[%s684_s1] sm:$0x3]  ;;  %v226_v26 = vsub.s32 %v223_v18, %v646_v19  ;;  %vm492_vm11 = vcmask 1047559   ;;  %vm495_vm12 = vcmask 15360  }
   0x7   :  { %533 = vmatprep.subr.mxu1 %v559_v0  ;;  %524 = vmatprep.mubr.msk.f32.mxu0 %vm37_vm1, %v26_v7  ;;  %v504_v17 = vld [vmem:[%s685_s5] ss:$0 sm:$0xff]  ;;  %v563_v7 = vmov 1983009808  }
   0x8   :  { %534 = vmatpush3.msra.mxu1 %v126_v6  ;;  %525 = vmatmul.mubr.msk.f32.vlgmr.msra.gmra.mxu0 %vm37_vm1, %v27_v8  ;;  %v506_v23 = vld [vmem:[%s686_s6] ss:$0 sm:$0xff]  ;;  %v337_v8 = vunpack.c.l.s4 %v563_v7 }
   0x9   :  { %535 = vmatprep.subr.mxu1 %v559_v0  ;;  %v501_v27 = vld [vmem:[%s687_s3] ss:$0 sm:$0xff]  ;;  %552 = vset.pattern.permute.xlu0 %v562_v53 }
   0xa   :  { %536 = vmatpush3.msra.mxu1 %v125_v9  ;;  %551 = vset.pattern.permute.xlu1 %v562_v53  ;;  %v338_v9 = vunpack.c.0.s8 %v337_v8 }
   0xb   :  { %537 = vmatprep.subr.mxu1 %v559_v0 }
   0xc   :  { %538 = vmatpush3.msra.mxu1 %v124_v10 }
   0xd   :  { %539 = vmatprep.subr.mxu1 %v559_v0 }
   0xe   :  { %540 = vmatpush3.msra.mxu1 %v123_v11  ;;  %v341_v11 = vsub.s32 %v338_v9, %v646_v19 }
   0xf   :  { %541 = vmatprep.subr.mxu1 %v559_v0 }
  0x10   :  { %542 = vmatpush3.msra.mxu1 %v122_v12 }
  0x11   :  { %544 = vmatmul.mubr.msk.f32.vlgmr.msra.gmra.mxu1 %vm137_vm2, %v121_v13 }
  0xc8   :  { %v526_v21 = vpop.f32.mrf.mxu0 }
  0xc9   :  { %v116_v34 = vadd.f32 %v526_v21, %v501_v27 }
  0xca   :  { %v110_v28 = vpop.f32.mrf.mxu0 }
  0xcb   :  { %v111_v31 = vadd.f32 %v501_v27, %v110_v28  ;;  %v120_v39 = vmax.f32 %v116_v34, 0.0 }
  0xcd   :  { %v119_v36 = vmax.f32 %v111_v31, 0.0 }
  0xd1   :  { %v207_v20 = vpop.f32.mrf.mxu1 }
  0xd2   :  { %v208_v22 = vadd.f32 %v504_v17, %v207_v20 }
  0xd3   :  { %v545_v24 = vpop.f32.mrf.mxu1 }
  0xd4   :  { %v211_v25 = vmax.f32 %v208_v22, 0.0 }
  0xd6   :  { %v219_v29 = vmul.f32 %v506_v23, %v211_v25 }
  0xd8   :  { %v227_v30 = vrot.slane %v219_v29, %v226_v26 }
  0xda   :  { %v228_v33 = vcombine.high %v227_v30, %v227_v30  ;;  %v235_v35 = vrot.slane %v227_v30, %v226_v26 }
  0xdc   :  { %v246_v37 = vrot.slane %v235_v35, %v245_v32  ;;  %v242_v38 = vrot.slane %v228_v33, %v226_v26 }
  0xde   :  { %v253_v40 = vmul.f32 %v246_v37, %v119_v36  ;;  %v250_v41 = vrot.slane %v242_v38, %v245_v32 }
  0xe0   :  { %v256_v42 = vsel %vm255_vm3, %v253_v40, 0.0  ;;  %v254_v43 = vmul.f32 %v250_v41, %v120_v39 }
  0xe1   :  { %257 = vadd.xlane.f32.xlu0 %v256_v42 }
  0xe2   :  { %v259_v44 = vsel %vm255_vm3, %v254_v43, 0.0 }
  0xe5   :  { %260 = vadd.xlane.f32.xlu0 %v259_v44 }
 0x16a   :  { %v258_v46 = vpop.xlane.xlu0 %257 }
 0x16b   :  { %v269_v49 = vrot.slane %v258_v46, %v657_v47 }
 0x16e   :  { %v261_v48 = vpop.xlane.xlu0 %260 }
 0x16f   :  { %v273_v50 = vrot.slane %v261_v48, %v657_v47 }
 0x171   :  { %v275_v51 = vsel %vm274_vm4, %v273_v50, %v269_v49 }
 0x172   :  { %v278_v52 = vsel %vm277_vm5, %v275_v51, -inf }
 0x173   :  { %279 = vmax.xlane.f32.xlu1 %v278_v52 }
 0x1fc   :  { %v280_v55 = vpop.xlane.xlu1 %279 }
 0x1fd   :  { %v285_v56 = vrot.slane %v280_v55, %v245_v32  ;;  %v289_v57 = vrot.slane %v280_v55, %v288_v54 }
 0x1ff   :  { %v292_v58 = vsub.f32 %v258_v46, %v285_v56  ;;  %v293_v59 = vsub.f32 %v261_v48, %v289_v57 }
 0x201   :  { %v294_v60 = vmul.f32 1.442695, %v292_v58  ;;  %v296_v61 = vmul.f32 1.442695, %v293_v59 }
 0x203   :  { %553 = vpow2.f32 %v294_v60 }
 0x204   :  { %555 = vpow2.f32 %v296_v61 }
 0x210   :  { %v554_v62 = vpop.eup %553 }
 0x211   :  { %v556_v63 = vpop.eup %555  ;;  %301 = vperm.xlu1 %551, %v554_v62  }
 0x212   :  { %304 = vperm.xlu0 %552, %v556_v63  }
 0x28c   :  { %v302_v0 = vpop.permute.xlu1 %301 }
 0x28d   :  { %v305_v1 = vpop.permute.xlu0 %304  ;;  %v309_v2 = vrot.slane %v302_v0, %v657_v47 }
 0x28e   :  { %v313_v3 = vrot.slane %v305_v1, %v657_v47 }
 0x290   :  { %v314_v4 = vsel %vm274_vm4, %v313_v3, %v309_v2 }
 0x291   :  { %v316_v5 = vsel %vm277_vm5, %v314_v4, 0.0 }
 0x292   :  { %317 = vadd.xlane.f32.xlu1 %v316_v5 }
 0x31b   :  { %v318_v6 = vpop.xlane.xlu1 %317 }
 0x31c   :  { %557 = vrcp.f32 %v318_v6 }
 0x329   :  { %v558_v10 = vpop.eup %557 }
 0x32a   :  { %v324_v12 = vrot.slane %v558_v10, %v245_v32  ;;  %v328_v13 = vrot.slane %v558_v10, %v288_v54 }
 0x32c   :  { %v331_v14 = vmul.f32 %v554_v62, %v324_v12  ;;  %v332_v15 = vmul.f32 %v556_v63, %v328_v13 }
 0x32e   :  { %v342_v16 = vrot.slane %v331_v14, %v341_v11  ;;  %v335_v17 = vcombine.high %v331_v14, %v331_v14  ;;  %v352_v18 = vcombine.high %v332_v15, %v332_v15  ;;  %v359_v27 = vrot.slane %v332_v15, %v341_v11 }
 0x330   :  { %v375_v20 = vrot.slane %v342_v16, %v341_v11  ;;  %v349_v21 = vrot.slane %v335_v17, %v341_v11  ;;  %v350_v22 = vcombine.high %v342_v16, %v342_v16  ;;  %v366_v23 = vrot.slane %v352_v18, %v341_v11 }
 0x331   :  { %v403_v19 = vrot.slane %v359_v27, %v341_v11  ;;  %v367_v29 = vcombine.high %v359_v27, %v359_v27 }
 0x332   :  { %426 = vperm.xlu0 %552, %v375_v20   ;;  %v389_v24 = vrot.slane %v349_v21, %v341_v11  ;;  %v368_v25 = vcombine.high %v366_v23, %v366_v23  ;;  %v382_v26 = vrot.slane %v350_v22, %v341_v11  ;;  %v351_v31 = vcombine.high %v349_v21, %v349_v21 }
 0x333   :  { %v410_v30 = vrot.slane %v367_v29, %v341_v11  ;;  %v417_v33 = vrot.slane %v366_v23, %v341_v11 }
 0x334   :  { %432 = vperm.xlu1 %551, %v389_v24   ;;  %v424_v28 = vrot.slane %v368_v25, %v341_v11  ;;  %v396_v32 = vrot.slane %v351_v31, %v341_v11 }
 0x336   :  { %429 = vperm.xlu0 %552, %v382_v26  }
 0x338   :  { %447 = vperm.xlu1 %551, %v424_v28  }
 0x33a   :  { %438 = vperm.xlu0 %552, %v403_v19  }
 0x33e   :  { %441 = vperm.xlu0 %552, %v410_v30  }
 0x342   :  { %435 = vperm.xlu0 %552, %v396_v32  }
 0x346   :  { %444 = vperm.xlu0 %552, %v417_v33  }
 0x3ad   :  { %v427_v34 = vpop.permute.xlu0 %426 }
 0x3ae   :  { %v452_v39 = vrot.slane %v427_v34, %v657_v47 }
 0x3af   :  { %v433_v40 = vpop.permute.xlu1 %432 }
 0x3b0   :  { %v460_v42 = vrot.slane %v433_v40, %v657_v47 }
 0x3b1   :  { %v430_v35 = vpop.permute.xlu0 %429 }
 0x3b2   :  { %v456_v37 = vrot.slane %v430_v35, %v657_v47 }
 0x3b3   :  { %v448_v48 = vpop.permute.xlu1 %447 }
 0x3b4   :  { %v481_v41 = vsel %vm274_vm4, %v456_v37, %v452_v39  ;;  %v480_v55 = vrot.slane %v448_v48, %v657_v47 }
 0x3b5   :  { %v439_v36 = vpop.permute.xlu0 %438  ;;  %v483_v46 = vsel %vm482_vm6, %v460_v42, %v481_v41 }
 0x3b6   :  { %v468_v45 = vrot.slane %v439_v36, %v657_v47 }
 0x3b9   :  { %v442_v38 = vpop.permute.xlu0 %441 }
 0x3ba   :  { %v472_v49 = vrot.slane %v442_v38, %v657_v47 }
 0x3bd   :  { %v436_v43 = vpop.permute.xlu0 %435 }
 0x3be   :  { %v464_v44 = vrot.slane %v436_v43, %v657_v47 }
 0x3c0   :  { %v485_v50 = vsel %vm484_vm7, %v464_v44, %v483_v46 }
 0x3c1   :  { %v487_v51 = vsel %vm486_vm8, %v468_v45, %v485_v50  ;;  %v445_v52 = vpop.permute.xlu0 %444 }
 0x3c2   :  { %v489_v53 = vsel %vm488_vm9, %v472_v49, %v487_v51  ;;  %v476_v54 = vrot.slane %v445_v52, %v657_v47 }
 0x3c4   :  { %v491_v56 = vsel %vm490_vm10, %v476_v54, %v489_v53 }
 0x3c5   :  { %v493_v57 = vsel %vm492_vm11, %v480_v55, %v491_v56 }
 0x3c6   :  { %496 = vst.msk [vmem:[%s688_s7] sm:$0xff] %vm495_vm12, %v493_v57 }

</bundles_post_ra>
